<compile_context>
chip_gen: v5e
topology: v5e:2x2
jax: 0.10.0
libtpu: 0.0.40
codegen_flags: <defaults>
</compile_context>

<pallas_src>
import functools

import jax
import jax.numpy as jnp
import numpy as np
from jax.experimental import pallas as pl
from jax.experimental.pallas import tpu as pltpu


def _bilinear_matrix(out_size: int, in_size: int) -> np.ndarray:
    """Interpolation matrix A (out_size, in_size), bilinear, half-pixel (align_corners=False)."""
    A = np.zeros((out_size, in_size), dtype=np.float32)
    scale = in_size / out_size
    for i in range(out_size):
        src = (i + 0.5) * scale - 0.5
        if src < 0.0:
            src = 0.0
        i0 = int(np.floor(src))
        i0 = min(i0, in_size - 1)
        i1 = min(i0 + 1, in_size - 1)
        lam1 = src - i0
        lam0 = 1.0 - lam1
        A[i, i0] += lam0
        A[i, i1] += lam1
    return A


def _pick_tile(full: int, want: int, quantum: int) -> int:
    """Largest multiple of `quantum` that divides `full` and is <= want; else `full`."""
    if full <= want:
        return full
    best = full
    t = quantum
    while t <= min(want, full):
        if full % t == 0:
            best = t
        t += quantum
    return best


def _ohem_ce_map_kernel(preds_ref, label_ref, ah_ref, awt_ref,
                        ce_ref, pt_ref, slab_ref, *, C, Hp, TW):
    """One (n, w-tile, h-tile) step: upsample logits, softmax over C, CE + p_true of the label.

    preds_ref: (1, C*Hp, Wp) bf16 logits (channel-major rows) — constant across spatial tiles
    label_ref: (1, TH, TW)  int32
    ah_ref:    (TH, Hp)     bf16 row-interpolation slice
    awt_ref:   (Wp, TW)     bf16 column-interpolation slice (transposed)
    ce_ref:    (1, TH, TW)  f32  -log softmax(up)[label]   (garbage where label >= C; masked later)
    pt_ref:    (1, TH, TW)  f32  softmax(up)[label]
    slab_ref:  (Hp, C*TW)   bf16 scratch: cached column-pass result for the current (n, w) tile
    """
    # Column pass: only when the W-tile changes (h-tile axis is innermost -> h == 0).
    @pl.when(pl.program_id(2) == 0)
    def _():
        awt = awt_ref[...]                                             # (Wp, TW) bf16
        for c in range(C):                                             # static, C is small
            xc = preds_ref[0, c * Hp:(c + 1) * Hp, :]                  # (Hp, Wp) bf16
            t = jnp.dot(xc, awt, preferred_element_type=jnp.float32)   # (Hp, TW) f32
            slab_ref[:, c * TW:(c + 1) * TW] = t.astype(slab_ref.dtype)

    # Fat row pass: all channels in one (TH, Hp) @ (Hp, C*TW) MXU matmul.
    ah = ah_ref[...]                                                   # (TH, Hp) bf16
    u_all = jnp.dot(ah, slab_ref[...], preferred_element_type=jnp.float32)  # (TH, C*TW) f32

    lab = label_ref[0]                                                 # (TH, TW) int32

    # Online softmax over channels; single exp per step (exp(min - max) + select trick).
    u0 = u_all[:, 0:TW]
    m = u0                                                             # running max
    s = jnp.ones_like(u0)                                              # running sum of exp(u - m)
    logit_t = jnp.where(lab == 0, u0, 0.0)                             # logit of the true class
    for c in range(1, C):
        u = u_all[:, c * TW:(c + 1) * TW]
        m_new = jnp.maximum(m, u)
        d = jnp.exp(jnp.minimum(m, u) - m_new)
        s = jnp.where(u > m, s * d + 1.0, s + d)
        m = m_new
        logit_t = logit_t + jnp.where(lab == c, u, 0.0)

    lse = m + jnp.log(s)                                               # log-sum-exp over channels
    ce = lse - logit_t
    ce_ref[0] = ce
    pt_ref[0] = jnp.exp(-ce)                                           # prob of the true class


def _upsample_ce_map(preds: jax.Array, target: jax.Array, *,
                     tile_h: int = 256, tile_w: int = 512):
    """Returns (ce, p_true), each (N, H, W) f32, for bilinearly-upsampled logits."""
    N, C, Hp, Wp = preds.shape
    Nt, H, W = target.shape
    assert N == Nt, "batch mismatch between preds and target"

    TH = _pick_tile(H, tile_h, 8)
    TW = _pick_tile(W, tile_w, 128)
    n_ht = H // TH
    n_wt = W // TW

    A_h = jnp.asarray(_bilinear_matrix(H, Hp), dtype=jnp.bfloat16)     # (H, Hp)
    A_wT = jnp.asarray(_bilinear_matrix(W, Wp).T, dtype=jnp.bfloat16)  # (Wp, W)

    preds_cm = preds.astype(jnp.bfloat16).reshape(N, C * Hp, Wp)       # free reshape, bf16 feed
    label = target.astype(jnp.int32)

    kernel = functools.partial(_ohem_ce_map_kernel, C=C, Hp=Hp, TW=TW)

    flops = 2 * N * C * Hp * W * (Wp + H)                              # column + row matmuls
    transcendentals = N * H * W * (C + 1)
    bytes_accessed = (2 * preds_cm.size + 4 * label.size + 2 * 4 * N * H * W
                      + 2 * (A_h.size + A_wT.size))

    ce, pt = pl.pallas_call(
        kernel,
        out_shape=(jax.ShapeDtypeStruct((N, H, W), jnp.float32),
                   jax.ShapeDtypeStruct((N, H, W), jnp.float32)),
        grid=(N, n_wt, n_ht),                                          # h-tile innermost
        in_specs=[
            pl.BlockSpec((1, C * Hp, Wp), lambda n, w, h: (n, 0, 0)),  # resident across tiles
            pl.BlockSpec((1, TH, TW), lambda n, w, h: (n, h, w)),
            pl.BlockSpec((TH, Hp), lambda n, w, h: (h, 0)),
            pl.BlockSpec((Wp, TW), lambda n, w, h: (0, w)),            # only (Wp,TW) resident
        ],
        out_specs=[
            pl.BlockSpec((1, TH, TW), lambda n, w, h: (n, h, w)),
            pl.BlockSpec((1, TH, TW), lambda n, w, h: (n, h, w)),
        ],
        scratch_shapes=[pltpu.VMEM((Hp, C * TW), jnp.bfloat16)],       # column-pass cache
        compiler_params=pltpu.CompilerParams(
            # h carries the slab cache -> "arbitrary"; n / w-tile are independent.
            dimension_semantics=("parallel", "parallel", "arbitrary"),
            # Per-step budget is sized to <= ~24-28 MiB so it fits v7x's 64 MiB physical VMEM
            # with double-buffering headroom; 32 MiB scoped limit is enough on all generations.
            vmem_limit_bytes=32 * 1024 * 1024,
        ),
        cost_estimate=pl.CostEstimate(
            flops=flops,
            transcendentals=transcendentals,
            bytes_accessed=bytes_accessed,
        ),
    )(preds_cm, label, A_h, A_wT)
    return ce, pt


def criterion_ohem_cross_entropy(preds: jax.Array, target: jax.Array, *,
                                 ignore_index: int = 255, thres: float = 0.6,
                                 min_kept: int = 200000,
                                 tile_h: int = 256, tile_w: int = 512) -> jax.Array:
    """preds: (N, C, Hp, Wp) logits; target: (N, H, W) int labels. Returns scalar f32 loss."""
    ce, p_t = _upsample_ce_map(preds, target, tile_h=tile_h, tile_w=tile_w)
    label = target.astype(jnp.int32)

    valid = label != ignore_index
    num_valid = jnp.sum(valid)

    # OHEM threshold: min_kept-th smallest valid p_true via top_k (O(n), no global sort).
    if min_kept > 0:
        flat = jnp.where(valid, p_t, jnp.inf).reshape(-1)
        k = int(min(min_kept, flat.size))
        neg_smallest, _ = jax.lax.top_k(-flat, k)      # k smallest p_t, ascending in p_t
        smallest = -neg_smallest
        idx = jnp.clip(jnp.minimum(min_kept, num_valid) - 1, 0, k - 1)
        p_k = smallest[idx]
        threshold = jnp.maximum(p_k, jnp.float32(thres))
    else:
        threshold = jnp.float32(thres)
    # Original code path: if min_kept >= num_valid, keep every valid pixel.
    threshold = jnp.where(min_kept >= num_valid, jnp.float32(jnp.inf), threshold)

    kept = valid & (p_t <= threshold)
    n_kept = jnp.sum(kept).astype(jnp.float32)
    # Matches the PyTorch module: if nothing is kept the loss is 0/0 = NaN.
    loss = jnp.sum(jnp.where(kept, ce, 0.0)) / n_kept
    return loss


# ----------------------------------------------------------------------------
# Pure NumPy references.
# ----------------------------------------------------------------------------
def _ref_criterion_ohem(preds, target, ignore_index=255, thres=0.6, min_kept=200000):
    """Full f32 reference mirroring the original PyTorch OhemCrossEntropy2d logic."""
    preds = np.asarray(preds, dtype=np.float32)
    target = np.asarray(target)
    N, C, Hp, Wp = preds.shape
    _, H, W = target.shape

    A_h = _bilinear_matrix(H, Hp)
    A_w = _bilinear_matrix(W, Wp)
    up = np.einsum("hp,ncpq,wq->nchw", A_h, preds, A_w).astype(np.float32)

    xm = up.max(axis=1, keepdims=True)
    e = np.exp(up - xm)
    denom = e.sum(axis=1, keepdims=True)
    prob = e / denom
    logprob = up - xm - np.log(denom)

    label = target.reshape(-1).astype(np.int64)
    prob_flat = np.moveaxis(prob, 1, 0).reshape(C, -1)
    logprob_flat = np.moveaxis(logprob, 1, 0).reshape(C, -1)

    valid = label != ignore_index
    num_valid = int(valid.sum())
    kept_mask = valid.copy()
    if min_kept >= num_valid:
        pass
    elif num_valid > 0:
        valid_inds = np.where(valid)[0]
        p = prob_flat[label[valid_inds], valid_inds]
        threshold = thres
        if min_kept > 0:
            idx = p.argsort()
            ti = idx[min(len(idx), min_kept) - 1]
            if p[ti] > thres:
                threshold = p[ti]
        kept = p <= threshold
        kept_mask = np.zeros_like(valid)
        kept_mask[valid_inds[kept]] = True

    safe_label = np.where(kept_mask, label, 0)
    ce = -logprob_flat[safe_label, np.arange(label.size)]
    if kept_mask.sum() == 0:
        return np.float32(np.nan)
    return np.float32(ce[kept_mask].mean())


def _ref_ohem_from_maps(ce_map, p_map, target, ignore_index=255, thres=0.6, min_kept=200000):
    """OHEM threshold / keep / mean logic applied to the kernel's own CE and p_true maps."""
    ce = np.asarray(ce_map, np.float64).reshape(-1)
    p = np.asarray(p_map, np.float64).reshape(-1)
    label = np.asarray(target).reshape(-1)
    valid = label != ignore_index
    num_valid = int(valid.sum())
    kept = valid.copy()
    if min_kept < num_valid and num_valid > 0:
        pv = np.sort(p[valid])
        threshold = thres
        if min_kept > 0:
            ti = min(len(pv), min_kept) - 1
            if pv[ti] > thres:
                threshold = pv[ti]
        kept = valid & (p <= threshold)
    if kept.sum() == 0:
        return np.nan
    return float(ce[kept].mean())


if __name__ == "__main__":
    key = jax.random.PRNGKey(0)
    k1, k2, k3 = jax.random.split(key, 3)

    # Small shapes that still exercise the (N, W-tile, H-tile) grid and the slab cache.
    N, C, Hp, Wp = 2, 4, 16, 64
    H, W = 32, 256                       # 2x / 4x bilinear upsample; W lane-dense
    TILE_H, TILE_W = 16, 128             # -> grid (2, 2, 2)

    preds = jax.random.normal(k1, (N, C, Hp, Wp), dtype=jnp.float32)
    labels = jax.random.randint(k2, (N, H, W), 0, C)
    ignore_mask = jax.random.bernoulli(k3, 0.15, (N, H, W))
    target = jnp.where(ignore_mask, 255, labels).astype(jnp.int32)

    ce_map, p_map = _upsample_ce_map(preds, target, tile_h=TILE_H, tile_w=TILE_W)
    jax.block_until_ready((ce_map, p_map))

    # Check the per-pixel CE / p_true maps against a pure-JAX f32 reference.
    # Loose tolerance: the kernel feeds bf16 to the MXU (f32 accumulation).
    up_jax = jax.image.resize(preds, (N, C, H, W), method="linear")
    logp = jax.nn.log_softmax(up_jax, axis=1)
    safe_lab = jnp.clip(target, 0, C - 1)[:, None, :, :]
    ce_ref_map = -jnp.take_along_axis(logp, safe_lab, axis=1)[:, 0]
    valid_np = np.asarray(target) != 255
    np.testing.assert_allclose(np.asarray(ce_map)[valid_np],
                               np.asarray(ce_ref_map)[valid_np],
                               rtol=5e-2, atol=5e-2)
    np.testing.assert_allclose(np.asarray(p_map)[valid_np],
                               np.exp(-np.asarray(ce_ref_map))[valid_np],
                               rtol=5e-2, atol=5e-2)

    # Default hyper-params: min_kept >= num_valid -> plain masked CE over valid pixels.
    loss_default = criterion_ohem_cross_entropy(preds, target,
                                                tile_h=TILE_H, tile_w=TILE_W)
    # Small min_kept exercises the hard-example threshold (top_k) path.
    loss_ohem = criterion_ohem_cross_entropy(preds, target, min_kept=50,
                                             tile_h=TILE_H, tile_w=TILE_W)
    jax.block_until_ready((loss_default, loss_ohem))

    ref_default = _ref_criterion_ohem(preds, target)
    np.testing.assert_allclose(np.asarray(loss_default), ref_default, rtol=3e-2, atol=3e-2)

    # OHEM path: validate the threshold / keep / mean logic exactly against NumPy applied to
    # the kernel's own maps (avoids keep-set flips from bf16-vs-f32 logits near the threshold).
    ref_ohem = _ref_ohem_from_maps(ce_map, p_map, target, min_kept=50)
    np.testing.assert_allclose(np.asarray(loss_ohem), ref_ohem, rtol=1e-4, atol=1e-5)

    print("KERNEL_OK")
</pallas_src>

<mosaic_0001>
module attributes {stable_mosaic.version = 11 : i64} {
  func.func @_ohem_ce_map_kernel(%arg0: i32, %arg1: i32, %arg2: i32, %arg3: memref<1x64x64xbf16, #tpu.memory_space<vmem>>, %arg4: memref<1x16x128xi32, #tpu.memory_space<vmem>>, %arg5: memref<16x16xbf16, #tpu.memory_space<vmem>>, %arg6: memref<64x128xbf16, #tpu.memory_space<vmem>>, %arg7: memref<1x16x128xf32, #tpu.memory_space<vmem>>, %arg8: memref<1x16x128xf32, #tpu.memory_space<vmem>>, %arg9: memref<16x512xbf16, #tpu.memory_space<vmem>>) attributes {dimension_semantics = [#tpu.dimension_semantics<parallel>, #tpu.dimension_semantics<parallel>, #tpu.dimension_semantics<arbitrary>], iteration_bounds = array<i64: 2, 2, 2>, scalar_prefetch = 0 : i64, scratch_operands = 1 : i64, tpu.core_type = #tpu.core_type<tc>, window_params = [{transform_indices = @transform_0, window_bounds = array<i64: 1, 64, 64>}, {transform_indices = @transform_1, window_bounds = array<i64: 1, 16, 128>}, {transform_indices = @transform_2, window_bounds = array<i64: 16, 16>}, {transform_indices = @transform_3, window_bounds = array<i64: 64, 128>}, {transform_indices = @transform_4, window_bounds = array<i64: 1, 16, 128>}, {transform_indices = @transform_5, window_bounds = array<i64: 1, 16, 128>}]} {
    %c0_i32 = arith.constant 0 : i32
    %0 = arith.cmpi eq, %arg2, %c0_i32 : i32
    %1 = arith.extui %0 : i1 to i32
    %c0_i32_0 = arith.constant 0 : i32
    %2 = arith.cmpi ne, %1, %c0_i32_0 : i32
    scf.if %2 {
      %c0_23 = arith.constant 0 : index
      %c0_24 = arith.constant 0 : index
      %74 = vector.load %arg6[%c0_23, %c0_24] : memref<64x128xbf16, #tpu.memory_space<vmem>>, vector<64x128xbf16>
      %c0_25 = arith.constant 0 : index
      %c0_26 = arith.constant 0 : index
      %c0_27 = arith.constant 0 : index
      %75 = vector.load %arg3[%c0_25, %c0_26, %c0_27] : memref<1x64x64xbf16, #tpu.memory_space<vmem>>, vector<1x16x64xbf16>
      %76 = vector.shape_cast %75 : vector<1x16x64xbf16> to vector<16x64xbf16>
      %cst_28 = arith.constant dense<0.000000e+00> : vector<16x128xf32>
      %77 = tpu.matmul %76, %74, %cst_28 {dimension_numbers = #tpu.dot_dimension_numbers<[1], [0], [0], [1], [0, 0, 1, 1], [], []>} : vector<16x64xbf16>, vector<64x128xbf16>, vector<16x128xf32> -> vector<16x128xf32>
      %78 = arith.truncf %77 : vector<16x128xf32> to vector<16x128xbf16>
      %c0_29 = arith.constant 0 : index
      %c0_30 = arith.constant 0 : index
      %79 = vector.load %arg9[%c0_29, %c0_30] : memref<16x512xbf16, #tpu.memory_space<vmem>>, vector<16x128xbf16>
      tpu.vector_store %arg9[%c0_29, %c0_30], %78 {strides = array<i32>} : memref<16x512xbf16, #tpu.memory_space<vmem>>, vector<16x128xbf16>,
      %c0_31 = arith.constant 0 : index
      %c16 = arith.constant 16 : index
      %c0_32 = arith.constant 0 : index
      %80 = vector.load %arg3[%c0_31, %c16, %c0_32] : memref<1x64x64xbf16, #tpu.memory_space<vmem>>, vector<1x16x64xbf16>
      %81 = vector.shape_cast %80 : vector<1x16x64xbf16> to vector<16x64xbf16>
      %cst_33 = arith.constant dense<0.000000e+00> : vector<16x128xf32>
      %82 = tpu.matmul %81, %74, %cst_33 {dimension_numbers = #tpu.dot_dimension_numbers<[1], [0], [0], [1], [0, 0, 1, 1], [], []>} : vector<16x64xbf16>, vector<64x128xbf16>, vector<16x128xf32> -> vector<16x128xf32>
      %83 = arith.truncf %82 : vector<16x128xf32> to vector<16x128xbf16>
      %c0_34 = arith.constant 0 : index
      %c128 = arith.constant 128 : index
      %84 = vector.load %arg9[%c0_34, %c128] : memref<16x512xbf16, #tpu.memory_space<vmem>>, vector<16x128xbf16>
      tpu.vector_store %arg9[%c0_34, %c128], %83 {strides = array<i32>} : memref<16x512xbf16, #tpu.memory_space<vmem>>, vector<16x128xbf16>,
      %c0_35 = arith.constant 0 : index
      %c32 = arith.constant 32 : index
      %c0_36 = arith.constant 0 : index
      %85 = vector.load %arg3[%c0_35, %c32, %c0_36] : memref<1x64x64xbf16, #tpu.memory_space<vmem>>, vector<1x16x64xbf16>
      %86 = vector.shape_cast %85 : vector<1x16x64xbf16> to vector<16x64xbf16>
      %cst_37 = arith.constant dense<0.000000e+00> : vector<16x128xf32>
      %87 = tpu.matmul %86, %74, %cst_37 {dimension_numbers = #tpu.dot_dimension_numbers<[1], [0], [0], [1], [0, 0, 1, 1], [], []>} : vector<16x64xbf16>, vector<64x128xbf16>, vector<16x128xf32> -> vector<16x128xf32>
      %88 = arith.truncf %87 : vector<16x128xf32> to vector<16x128xbf16>
      %c0_38 = arith.constant 0 : index
      %c256 = arith.constant 256 : index
      %89 = vector.load %arg9[%c0_38, %c256] : memref<16x512xbf16, #tpu.memory_space<vmem>>, vector<16x128xbf16>
      tpu.vector_store %arg9[%c0_38, %c256], %88 {strides = array<i32>} : memref<16x512xbf16, #tpu.memory_space<vmem>>, vector<16x128xbf16>,
      %c0_39 = arith.constant 0 : index
      %c48 = arith.constant 48 : index
      %c0_40 = arith.constant 0 : index
      %90 = vector.load %arg3[%c0_39, %c48, %c0_40] : memref<1x64x64xbf16, #tpu.memory_space<vmem>>, vector<1x16x64xbf16>
      %91 = vector.shape_cast %90 : vector<1x16x64xbf16> to vector<16x64xbf16>
      %cst_41 = arith.constant dense<0.000000e+00> : vector<16x128xf32>
      %92 = tpu.matmul %91, %74, %cst_41 {dimension_numbers = #tpu.dot_dimension_numbers<[1], [0], [0], [1], [0, 0, 1, 1], [], []>} : vector<16x64xbf16>, vector<64x128xbf16>, vector<16x128xf32> -> vector<16x128xf32>
      %93 = arith.truncf %92 : vector<16x128xf32> to vector<16x128xbf16>
      %c0_42 = arith.constant 0 : index
      %c384 = arith.constant 384 : index
      %94 = vector.load %arg9[%c0_42, %c384] : memref<16x512xbf16, #tpu.memory_space<vmem>>, vector<16x128xbf16>
      tpu.vector_store %arg9[%c0_42, %c384], %93 {strides = array<i32>} : memref<16x512xbf16, #tpu.memory_space<vmem>>, vector<16x128xbf16>,
    } else {
    }
    %c0 = arith.constant 0 : index
    %c0_1 = arith.constant 0 : index
    %3 = vector.load %arg5[%c0, %c0_1] : memref<16x16xbf16, #tpu.memory_space<vmem>>, vector<16x16xbf16>
    %c0_2 = arith.constant 0 : index
    %c0_3 = arith.constant 0 : index
    %4 = vector.load %arg9[%c0_2, %c0_3] : memref<16x512xbf16, #tpu.memory_space<vmem>>, vector<16x512xbf16>
    %cst = arith.constant dense<0.000000e+00> : vector<16x512xf32>
    %5 = tpu.matmul %3, %4, %cst {dimension_numbers = #tpu.dot_dimension_numbers<[1], [0], [0], [1], [0, 0, 1, 1], [], []>} : vector<16x16xbf16>, vector<16x512xbf16>, vector<16x512xf32> -> vector<16x512xf32>
    %c0_4 = arith.constant 0 : index
    %c0_5 = arith.constant 0 : index
    %c0_6 = arith.constant 0 : index
    %6 = vector.load %arg4[%c0_4, %c0_5, %c0_6] : memref<1x16x128xi32, #tpu.memory_space<vmem>>, vector<1x16x128xi32>
    %7 = vector.shape_cast %6 : vector<1x16x128xi32> to vector<16x128xi32>
    %8 = vector.extract_strided_slice %5 {offsets = [0, 0], sizes = [16, 128], strides = [1, 1]} : vector<16x512xf32> to vector<16x128xf32>
    %cst_7 = arith.constant 1.000000e+00 : f32
    %9 = vector.broadcast %cst_7 : f32 to vector<16x128xf32>
    %c0_i32_8 = arith.constant 0 : i32
    %10 = vector.broadcast %c0_i32_8 : i32 to vector<16x128xi32>
    %11 = arith.cmpi eq, %7, %10 : vector<16x128xi32>
    %cst_9 = arith.constant 0.000000e+00 : f32
    %12 = vector.broadcast %cst_9 : f32 to vector<16x128xf32>
    %13 = arith.select %11, %8, %12 : vector<16x128xi1>, vector<16x128xf32>
    %14 = vector.extract_strided_slice %5 {offsets = [0, 128], sizes = [16, 128], strides = [1, 1]} : vector<16x512xf32> to vector<16x128xf32>
    %15 = arith.maximumf %8, %14 : vector<16x128xf32>
    %16 = arith.minimumf %8, %14 : vector<16x128xf32>
    %17 = arith.subf %16, %15 : vector<16x128xf32>
    %18 = math.exp %17 : vector<16x128xf32>
    %19 = arith.cmpf ogt, %14, %8 : vector<16x128xf32>
    %20 = arith.mulf %9, %18 : vector<16x128xf32>
    %cst_10 = arith.constant 1.000000e+00 : f32
    %21 = vector.broadcast %cst_10 : f32 to vector<16x128xf32>
    %22 = arith.addf %20, %21 : vector<16x128xf32>
    %23 = arith.addf %9, %18 : vector<16x128xf32>
    %24 = arith.select %19, %22, %23 : vector<16x128xi1>, vector<16x128xf32>
    %c1_i32 = arith.constant 1 : i32
    %25 = vector.broadcast %c1_i32 : i32 to vector<16x128xi32>
    %26 = arith.cmpi eq, %7, %25 : vector<16x128xi32>
    %cst_11 = arith.constant 0.000000e+00 : f32
    %27 = vector.broadcast %cst_11 : f32 to vector<16x128xf32>
    %28 = arith.select %26, %14, %27 : vector<16x128xi1>, vector<16x128xf32>
    %29 = arith.addf %13, %28 : vector<16x128xf32>
    %30 = vector.extract_strided_slice %5 {offsets = [0, 256], sizes = [16, 128], strides = [1, 1]} : vector<16x512xf32> to vector<16x128xf32>
    %31 = arith.maximumf %15, %30 : vector<16x128xf32>
    %32 = arith.minimumf %15, %30 : vector<16x128xf32>
    %33 = arith.subf %32, %31 : vector<16x128xf32>
    %34 = math.exp %33 : vector<16x128xf32>
    %35 = arith.cmpf ogt, %30, %15 : vector<16x128xf32>
    %36 = arith.mulf %24, %34 : vector<16x128xf32>
    %cst_12 = arith.constant 1.000000e+00 : f32
    %37 = vector.broadcast %cst_12 : f32 to vector<16x128xf32>
    %38 = arith.addf %36, %37 : vector<16x128xf32>
    %39 = arith.addf %24, %34 : vector<16x128xf32>
    %40 = arith.select %35, %38, %39 : vector<16x128xi1>, vector<16x128xf32>
    %c2_i32 = arith.constant 2 : i32
    %41 = vector.broadcast %c2_i32 : i32 to vector<16x128xi32>
    %42 = arith.cmpi eq, %7, %41 : vector<16x128xi32>
    %cst_13 = arith.constant 0.000000e+00 : f32
    %43 = vector.broadcast %cst_13 : f32 to vector<16x128xf32>
    %44 = arith.select %42, %30, %43 : vector<16x128xi1>, vector<16x128xf32>
    %45 = arith.addf %29, %44 : vector<16x128xf32>
    %46 = vector.extract_strided_slice %5 {offsets = [0, 384], sizes = [16, 128], strides = [1, 1]} : vector<16x512xf32> to vector<16x128xf32>
    %47 = arith.maximumf %31, %46 : vector<16x128xf32>
    %48 = arith.minimumf %31, %46 : vector<16x128xf32>
    %49 = arith.subf %48, %47 : vector<16x128xf32>
    %50 = math.exp %49 : vector<16x128xf32>
    %51 = arith.cmpf ogt, %46, %31 : vector<16x128xf32>
    %52 = arith.mulf %40, %50 : vector<16x128xf32>
    %cst_14 = arith.constant 1.000000e+00 : f32
    %53 = vector.broadcast %cst_14 : f32 to vector<16x128xf32>
    %54 = arith.addf %52, %53 : vector<16x128xf32>
    %55 = arith.addf %40, %50 : vector<16x128xf32>
    %56 = arith.select %51, %54, %55 : vector<16x128xi1>, vector<16x128xf32>
    %c3_i32 = arith.constant 3 : i32
    %57 = vector.broadcast %c3_i32 : i32 to vector<16x128xi32>
    %58 = arith.cmpi eq, %7, %57 : vector<16x128xi32>
    %cst_15 = arith.constant 0.000000e+00 : f32
    %59 = vector.broadcast %cst_15 : f32 to vector<16x128xf32>
    %60 = arith.select %58, %46, %59 : vector<16x128xi1>, vector<16x128xf32>
    %61 = arith.addf %45, %60 : vector<16x128xf32>
    %62 = math.log %56 : vector<16x128xf32>
    %63 = arith.addf %47, %62 : vector<16x128xf32>
    %64 = arith.subf %63, %61 : vector<16x128xf32>
    %c0_16 = arith.constant 0 : index
    %c0_17 = arith.constant 0 : index
    %c0_18 = arith.constant 0 : index
    %65 = vector.load %arg7[%c0_16, %c0_17, %c0_18] : memref<1x16x128xf32, #tpu.memory_space<vmem>>, vector<1x16x128xf32>
    %66 = vector.shape_cast %65 : vector<1x16x128xf32> to vector<16x128xf32>
    %67 = vector.shape_cast %64 : vector<16x128xf32> to vector<1x16x128xf32>
    tpu.vector_store %arg7[%c0_16, %c0_17, %c0_18], %67 {strides = array<i32>} : memref<1x16x128xf32, #tpu.memory_space<vmem>>, vector<1x16x128xf32>,
    %cst_19 = arith.constant 0.000000e+00 : f32
    %68 = vector.broadcast %cst_19 : f32 to vector<16x128xf32>
    %69 = arith.subf %68, %64 : vector<16x128xf32>
    %70 = math.exp %69 : vector<16x128xf32>
    %c0_20 = arith.constant 0 : index
    %c0_21 = arith.constant 0 : index
    %c0_22 = arith.constant 0 : index
    %71 = vector.load %arg8[%c0_20, %c0_21, %c0_22] : memref<1x16x128xf32, #tpu.memory_space<vmem>>, vector<1x16x128xf32>
    %72 = vector.shape_cast %71 : vector<1x16x128xf32> to vector<16x128xf32>
    %73 = vector.shape_cast %70 : vector<16x128xf32> to vector<1x16x128xf32>
    tpu.vector_store %arg8[%c0_20, %c0_21, %c0_22], %73 {strides = array<i32>} : memref<1x16x128xf32, #tpu.memory_space<vmem>>, vector<1x16x128xf32>,
    return
  }
  func.func @transform_0(%arg0: i32, %arg1: i32, %arg2: i32) -> (i32, i32, i32) {
    %c0_i32 = arith.constant 0 : i32
    %c0_i32_0 = arith.constant 0 : i32
    %c0_i32_1 = arith.constant 0 : i32
    return %arg0, %c0_i32, %c0_i32_0 : i32, i32, i32
  }
  func.func @transform_1(%arg0: i32, %arg1: i32, %arg2: i32) -> (i32, i32, i32) {
    %c0_i32 = arith.constant 0 : i32
    return %arg0, %arg2, %arg1 : i32, i32, i32
  }
  func.func @transform_2(%arg0: i32, %arg1: i32, %arg2: i32) -> (i32, i32) {
    %c0_i32 = arith.constant 0 : i32
    %c0_i32_0 = arith.constant 0 : i32
    return %arg2, %c0_i32 : i32, i32
  }
  func.func @transform_3(%arg0: i32, %arg1: i32, %arg2: i32) -> (i32, i32) {
    %c0_i32 = arith.constant 0 : i32
    %c0_i32_0 = arith.constant 0 : i32
    return %c0_i32, %arg1 : i32, i32
  }
  func.func @transform_4(%arg0: i32, %arg1: i32, %arg2: i32) -> (i32, i32, i32) {
    %c0_i32 = arith.constant 0 : i32
    return %arg0, %arg2, %arg1 : i32, i32, i32
  }
  func.func @transform_5(%arg0: i32, %arg1: i32, %arg2: i32) -> (i32, i32, i32) {
    %c0_i32 = arith.constant 0 : i32
    return %arg0, %arg2, %arg1 : i32, i32, i32
  }
}

</mosaic_0001>

<bundles_post_ra>
// kernel: tpu_custom_call.1
= control target key start
LH: loop header
LB: loop body
LE: loop exit
PB: predicated region body
PF: predicated region fallthrough
CT: control target
= control target key end

     0   :  { %s2019_s0 = inlined_call_operand.hbm [shape: bf16[2,64,64], index: 0, kind: input, shape index: {}]   ;;  %s2020_s1 = inlined_call_operand.hbm [shape: s32[2,32,256], index: 1, kind: input, shape index: {}]   ;;  %s2021_s2 = inlined_call_operand.vmem [shape: bf16[32,16], index: 2, kind: input, shape index: {}]   ;;  %s2022_s3 = inlined_call_operand.hbm [shape: bf16[64,256], index: 3, kind: input, shape index: {}]   ;;  %s2023_s4 = inlined_call_operand.hbm [shape: f32[2,32,256], index: 4, kind: output, shape index: {0}]   ;;  %s2024_s5 = inlined_call_operand.hbm [shape: f32[2,32,256], index: 5, kind: output, shape index: {1}]  }
   0x1   :  { %2041 = sst [smem:[#allocation30_spill]] %s2019_s0 }
   0x2   :  { %2042 = sst [smem:[#allocation31_spill]] %s2020_s1 }
   0x3   :  { %2043 = sst [smem:[#allocation32_spill]] %s2021_s2 }
   0x4   :  { %2044 = sst [smem:[#allocation33_spill]] %s2022_s3 }
   0x5   :  { %2045 = sst [smem:[#allocation34_spill]] %s2023_s4 }
   0x6   :  { %2046 = sst [smem:[#allocation35_spill]] %s2024_s5 }
   0x7   :  { %11 = vsyncpa [#allocation4], 0 }
   0x8   :  { %13 = vsyncpa [#allocation4 + $0x1], 0 }
   0x9   :  { %14 = vsyncpa [#allocation7], 0 }
   0xa   :  { %16 = vsyncpa [#allocation7 + $0x1], 0 }
   0xb   :  { %17 = vsyncpa [#allocation5], 0 }
   0xc   :  { %19 = vsyncpa [#allocation5 + $0x1], 0 }
   0xd   :  { %20 = vsyncpa [#allocation11], 0 }
   0xe   :  { %22 = vsyncpa [#allocation11 + $0x1], 0  ;;  %s1596_s18 = smov 0   ;;  %s1598_s19 = smov 0  }
   0xf   :  { %s1600_s20 = smov 0   ;;  %s1602_s21 = smov 0  }
  0x10   :  { %s1604_s22 = smov 0   ;;  %s1606_s23 = smov 0  }
  0x11   :  { %s1608_s24 = smov 0   ;;  %s1610_s25 = smov 0  }
  0x12   :  { %s1612_s26 = smov 0   ;;  %s1614_s27 = smov 0  }
  0x13   :  { %s1616_s28 = smov 0   ;;  %s1618_s29 = smov 0  }
  0x14   :  { %s1620_s30 = smov 0   ;;  %s1622_s6 = smov 0  }
  0x15   :  { %s1624_s7 = smov 0   ;;  %s1626_s8 = smov 0  }
  0x16 LB: > { %2047 = sst [smem:[#allocation17_spill]] %s1508_s21  ;;  %s1677_s9 = sadd.s32 4294967295, %s1556_s8   ;;  %s1556_s8 = sphi %s1626_s8, %s28_s8   ;;  %s1552_s7 = sphi %s1624_s7, %s2091_s7   ;;  %s1548_s6 = sphi %s1622_s6, %s2090_s6   ;;  %s1544_s30 = sphi %s1620_s30, %s2101_s30   ;;  %s1540_s29 = sphi %s1618_s29, %s2088_s29   ;;  %s1536_s28 = sphi %s1616_s28, %s2087_s28   ;;  %s1532_s27 = sphi %s1614_s27, %s2100_s27   ;;  %s1528_s26 = sphi %s1612_s26, %s2099_s26   ;;  %s1524_s25 = sphi %s1610_s25, %s2098_s25   ;;  %s1520_s24 = sphi %s1608_s24, %s2097_s24   ;;  %s1516_s23 = sphi %s1606_s23, %s2096_s23   ;;  %s1512_s22 = sphi %s1604_s22, %s2095_s22   ;;  %s1508_s21 = sphi %s1602_s21, %s2086_s21   ;;  %s1504_s20 = sphi %s1600_s20, %s2094_s20   ;;  %s1500_s19 = sphi %s1598_s19, %s2093_s19   ;;  %s1496_s18 = sphi %s1596_s18, %s2092_s18  }
  0x17   : > { %2048 = sst [smem:[#allocation18_spill]] %s1512_s22  ;;  %s968_s10 = sadd.s32 4294967294, %s1556_s8  }
  0x18   : > { %2049 = sst [smem:[#allocation19_spill]] %s1532_s27  ;;  %s40_s11 = sadd.s32 1, %s1544_s30 }
  0x19   : > { %2050 = sst [smem:[#allocation20_spill]] %s1536_s28  ;;  %s43_s12 = sadd.s32 1, %s1548_s6 }
  0x1a   : > { %2051 = sst [smem:[#allocation21_spill]] %s1540_s29  ;;  %p41_p0 = scmp.ge.s32.totalorder %s40_s11, 2 }
  0x1b   : > { %2052 = sst [smem:[#allocation22_spill]] %s1548_s6  ;;  %s47_s13 = sadd.s32 1, %s1552_s7 }
  0x1c   : > { %2053 = sst [smem:[#allocation23_spill]] %s1552_s7  ;;  %p62_p1 = scmp.eq.s32.totalorder %s1556_s8, 0 }
  0x1d   : > { %p68_p2 = scmp.eq.s32.totalorder %s1677_s9, 0  ;;  %s2103_s11 = smov (%p41_p0, %s40_s11), 0 }
  0x1e   : > { %2054 = sst [smem:[#allocation24_spill]] %s2103_s11  ;;  %s2105_s12 = smov (!%p41_p0, %s43_s12), %s1548_s6 }
  0x1f   : > { %s78_s14 = ssub.s32 %s1544_s30, %s2103_s11  ;;  %s84_s15 = sadd.s32 1, %s1516_s23 }
  0x20   : > { %p45_p3 = scmp.ge.s32.totalorder %s2105_s12, 2  ;;  %p91_p4 = scmp.ne.s32.totalorder %s1516_s23, %s1512_s22 }
  0x21   : > { %p97_p5 = scmp.ne.s32.totalorder %s1512_s22, %s1508_s21  ;;  %p177_p6 = scmp.eq.s32.totalorder %s1677_s9, 7 }
  0x22   : > { %s2107_s12 = smov (%p45_p3, %s2105_s12), 0  ;;  %s2109_s13 = smov (!%p45_p3, %s47_s13), %s1552_s7 }
  0x23   : > { %2055 = sst [smem:[#allocation25_spill]] %s2107_s12  ;;  %s1701_s16 = ssub.s32 %s1548_s6, %s2107_s12 }
  0x24   : > { %p1705_p7 = por %p91_p4, %p62_p1  ;;  %p49_p8 = scmp.ge.s32.totalorder %s2109_s13, 2 }
  0x25   : > { %p1714_p9 = por %p97_p5, %p68_p2  ;;  %p1719_p11 = por %p177_p6, %p91_p4 }
  0x26   : > { %s2111_s13 = smov (%p49_p8, %s2109_s13), 0  ;;  %p183_p12 = scmp.eq.s32.totalorder %s968_s10, 7 }
  0x27   : > { %s2057_s11 = scalar_select %p1714_p9, 1, 0 }
  0x28   : > { %s2059_s12 = scalar_select %p1719_p11, 1, 0 }
  0x29   : > { %2058 = sst [smem:[#allocation26_spill]] %s2057_s11  ;;  %s1727_s5 = ssub.s32 %s1552_s7, %s2111_s13 }
  0x2a   : > { %2060 = sst [smem:[#allocation27_spill]] %s2059_s12  ;;  %p1106_p13 = scmp.lt.s32.totalorder %s1556_s8, 8 }
  0x2b   : > { %2061 = sst [smem:[#allocation28_spill]] %s2111_s13  ;;  %s79_s4 = sor.u32 %s78_s14, %s1727_s5 }
  0x2c   : > { %p1734_p0 = por %p183_p12, %p97_p5  ;;  %s81_s28 = sor.u32 %s1701_s16, %s79_s4 }
  0x2d   : > { %s255_s2 = sand.u32 1, %s1556_s8   ;;  %p82_p3 = scmp.eq.s32.totalorder %s81_s28, 0 }
  0x2e   : > { %s2062_s29 = scalar_select %p1734_p0, 1, 0 }
  0x2f   : > { %s257_s12 = sand.u32 1, %s1516_s23   ;;  %s1063_s27 = sshll.u32 %s1544_s30, 2 }
  0x30   : > { %2063 = sst [smem:[#allocation29_spill]] %s2062_s29  ;;  %s974_s10 = sshll.u32 %s257_s12, 4 }
  0x31   : > { %s1743_s11 = scalar_select %p82_p3, %s1516_s23, %s84_s15  }
  0x32   : > { %s264_s13 = sadd.s32 %s1548_s6, %s1063_s27  ;;  %s977_s3 = sshll.u32 %s1552_s7, 3 }
  0x33   : > { %s266_s14 = sadd.s32 %s977_s3, %s264_s13  ;;  %s259_s21 = scalar_lea.vmem [#allocation6], %s974_s10 }
  0x34   : > { %s271_s22 = sshll.u32 %s259_s21, 4  ;;  %s978_s29 = sshll.u32 %s266_s14, 3  ;;  %s272_s22 = int_to_ptr.vmem [resolvable:$true] %s271_s22 }
  0x35   : > { %s2064_s1 = sld [smem:[#allocation31_spill]]  ;;  %p1093_p4 = pnand %p1106_p13, %p1705_p7 }
  0x36   : > { %s1754_s21 = scalar_lea.sflag [#allocation7], %s255_s2  ;;  %s1558_s27 = smov 256  }
  0x37   : > { %s2038_s12 = smov 128   ;;  %s1560_s13 = smov 8  }
  0x38   : > { %p981_p5 = scmp.ge.s32.totalorder %s1556_s8, 1  ;;  %p309_p6 = scmp.lt.s32.totalorder %s1556_s8, 9 }
  0x39   : > { %p52_p7 = scmp.eq.s32.totalorder %s1727_s5, 0  ;;  %s54_s17 = sadd.s32 1, %s1528_s26 }
  0x3a   : > { %p1760_p8 = pnand %p981_p5, %p309_p6  ;;  %p61_p12 = scmp.ne.s32.totalorder %s1528_s26, %s1524_s25 }
  0x3b   : > { %s268_s15 = scalar_lea.hbm %s2064_s1, %s978_s29  ;;  %p67_p10 = scmp.ne.s32.totalorder %s1524_s25, %s1520_s24 }
  0x3c   : > { %s269_s3 = sshll.u32 %s268_s15, 4  ;;  %p63_p3 = por %p62_p1, %p61_p12  ;;  %s270_s3 = int_to_ptr.hbm [resolvable:$true] %s269_s3 }
  0x3d   : > { %1095 = dma.hbm_to_vmem [thread:$0]  (!%p1093_p4), %s270_s3, 256, %s272_s22, %s1754_s21, %s1558_s27, %s2038_s12, %s1560_s13  }
  0x3e   : > { %s1769_s10 = scalar_select %p52_p7, %s1528_s26, %s54_s17  }
  0x3f   : > { %s233_s2 = sand.u32 1, %s1528_s26   ;;  %s1062_s22 = sshll.u32 %s1552_s7, 5 }
  0x40   : > { %p1779_p4 = por %p68_p2, %p67_p10  ;;  %s971_s5 = sshll.u32 %s233_s2, 5 }
  0x41   : > { %s2067_s0 = sld [smem:[#allocation30_spill]]  ;;  %s237_s3 = scalar_lea.vmem [#allocation3], %s971_s5 }
  0x42   : > { %s245_s27 = sshll.u32 %s237_s3, 4  ;;  %p1090_p10 = pnand %p1106_p13, %p63_p3  ;;  %s246_s27 = int_to_ptr.vmem [resolvable:$true] %s245_s27 }
  0x43   : > { %s234_s13 = scalar_lea.sflag [#allocation4], %s233_s2  ;;  %s1561_s17 = smov 64  }
  0x44   : > { %s1562_s12 = smov 4   ;;  %s136_s1 = sadd.s32 1, %s1504_s20 }
  0x45   : > { %p2068_p5 = scmp.eq.s32.totalorder %s1701_s16, 0  ;;  %p143_p6 = scmp.ne.s32.totalorder %s1504_s20, %s1500_s19 }
  0x46   : > { %p149_p7 = scmp.ne.s32.totalorder %s1500_s19, %s1496_s18  ;;  %s980_s28 = sshll.u32 %s1548_s6, 2 }
  0x47   : > { %s242_s24 = scalar_lea.hbm %s2067_s0, %s1062_s22  ;;  %s292_s22 = sand.u32 1, %s1504_s20  }
  0x48   : > { %s243_s15 = sshll.u32 %s242_s24, 4  ;;  %p145_p12 = por %p143_p6, %p62_p1  ;;  %s244_s15 = int_to_ptr.hbm [resolvable:$true] %s243_s15 }
  0x49   : > { %1092 = dma.hbm_to_vmem [thread:$0]  (!%p1090_p10), %s244_s15, 512, %s246_s27, %s234_s13, %s1561_s17, %s1561_s17, %s1562_s12  }
  0x4a   : > { %s1792_s4 = scalar_select %p2068_p5, %s1504_s20, %s136_s1  }
  0x4b   : > { %p1804_p0 = por %p149_p7, %p68_p2  ;;  %s979_s2 = sshll.u32 %s292_s22, 5 }
  0x4c   : > { %s2070_s3 = sld [smem:[#allocation33_spill]]  ;;  %s294_s1 = scalar_lea.vmem [#allocation8], %s979_s2 }
  0x4d   : > { %s301_s13 = sshll.u32 %s294_s1, 4  ;;  %p1096_p3 = pnand %p1106_p13, %p145_p12  ;;  %s302_s13 = int_to_ptr.vmem [resolvable:$true] %s301_s13 }
  0x4e   : > { %s2071_s18 = smov 128   ;;  %s315_s0 = sand.u32 (!%p1760_p8), 1, %s1524_s25  }
  0x4f   : > { %s982_s22 = sshll.u32 (!%p1760_p8), %s315_s0, 5  ;;  %s316_s7 = scalar_lea.sflag (!%p1760_p8), [#allocation4], %s315_s0 }
  0x50   : > { %313 = sbr.rel (%p1760_p8) target bundleno = 484 (0x1e4), region = 36  ;;  %s1818_s6 = scalar_lea.vmem (!%p1760_p8), [#allocation3], %s982_s22 }
  0x52   : > { %s298_s27 = scalar_lea.hbm %s2070_s3, %s980_s28 }
  0x53   : > { %s299_s16 = sshll.u32 %s298_s27, 4  ;;  %s300_s16 = int_to_ptr.hbm [resolvable:$true] %s299_s16 }
  0x54   : > { %1098 = dma.hbm_to_vmem [thread:$0]  (!%p1096_p3), %s300_s16, 512, %s302_s13, %s1754_s21, %s2071_s18, %s1561_s17, %s1562_s12  }
  0x55   : > { %1475 = dma.done.wait (%p1779_p4), %s316_s7, 512  }
  0x56   : > { %1477 = vsyncadd (%p1779_p4), %s316_s7, 4294966784  ;;  %s2072_s28 = sld [smem:[#allocation18_spill]]  ;;  %s325_s24 = sand.u32 1, %s1677_s9  }
  0x57   : > { %s326_s29 = scalar_lea.sflag [#allocation7], %s325_s24 }
  0x5c   : > { %s1826_s21 = sand.u32 1, %s2072_s28  }
  0x5d   : > { %s1829_s12 = sshll.u32 %s1826_s21, 4 }
  0x5e   : > { %s329_s17 = scalar_lea.vmem [#allocation6], %s1829_s12 }
  0x5f   : > { %1479 = dma.done.wait (%p1714_p9), %s326_s29, 256  }
  0x60   : > { %1481 = vsyncadd (%p1714_p9), %s326_s29, 4294967040  ;;  %s337_s0 = sand.u32 1, %s1500_s19  }
  0x61   : > { %s984_s7 = sshll.u32 %s337_s0, 5 }
  0x62   : > { %s339_s14 = scalar_lea.vmem [#allocation8], %s984_s7 }
  0x63   : > { %1483 = dma.done.wait (%p1804_p0), %s326_s29, 512  }
  0x64   : > { %1485 = vsyncadd (%p1804_p0), %s326_s29, 4294966784  ;;  %s2074_s9 = sld [smem:[#allocation19_spill]]  ;;  %s1848_s18 = scalar_lea.vmem [#allocation9], %s1829_s12 }
  0x65   : > { %s2075_s1 = sld [smem:[#allocation32_spill]]  ;;  %s1851_s22 = scalar_lea.vmem [#allocation10], %s1829_s12 }
  0x6a   : > { %s987_s15 = sshll.u32 %s2074_s9, 1  ;;  %p989_p2 = scmp.ne.s32.totalorder %s2074_s9, 0 }
  0x6b   : > { %p389_p1 = scmp.lt.s32.totalorder %s987_s15, 3 }
  0x6c   : > { %400 = sbr.rel (%p989_p2) target bundleno = 274 (0x112), region = 52 }
  0x6d   : > { %s2113_s15 = smov (!%p389_p1, %s987_s15), 3 }
  0x6e   : > { %s988_s3 = sshll.u32 %s2113_s15, 2 }
  0x6f   : > { %s1845_s13 = scalar_lea.vmem %s2075_s1, %s988_s3 }
  0x71   : > { %v1067_v0 = vld [vmem:[%s339_s14 + $0x18] sm:$0xff]  ;;  %v1066_v1 = vld [vmem:[%s339_s14 + $0x10] sm:$0xff]  ;;  %v1065_v2 = vld [vmem:[%s339_s14 + $0x8] sm:$0xff]  ;;  %vm440_vm0 = vcmask 523264  }
  0x72   : > { %448 = vmatpush.bf16.msra.mxu0 %v1067_v0  ;;  %476 = vmatpush.bf16.msra.mxu1 %v1067_v0  ;;  %v1064_v3 = vld [vmem:[%s339_s14] sm:$0xff]  ;;  %v1069_v5 = vld [vmem:[%s1818_s6 + $0x8] sm:$0xff]  ;;  %v1070_v6 = vld [vmem:[%s1818_s6 + $0x10] sm:$0xff] }
  0x73   : > { %504 = vmatpush.bf16.msra.mxu2 %v1067_v0  ;;  %532 = vmatpush.bf16.msra.mxu3 %v1067_v0  ;;  %v1068_v4 = vld [vmem:[%s1818_s6] sm:$0xff]  ;;  %v1071_v7 = vld [vmem:[%s1818_s6 + $0x18] sm:$0xff] }
  0x76   : > { %449 = vmatpush.bf16.msra.mxu0 %v1066_v1  ;;  %477 = vmatpush.bf16.msra.mxu1 %v1066_v1 }
  0x77   : > { %505 = vmatpush.bf16.msra.mxu2 %v1066_v1  ;;  %533 = vmatpush.bf16.msra.mxu3 %v1066_v1 }
  0x7a   : > { %450 = vmatpush.bf16.msra.mxu0 %v1065_v2  ;;  %478 = vmatpush.bf16.msra.mxu1 %v1065_v2 }
  0x7b   : > { %506 = vmatpush.bf16.msra.mxu2 %v1065_v2  ;;  %534 = vmatpush.bf16.msra.mxu3 %v1065_v2 }
  0x7e   : > { %451 = vmatpush.bf16.msra.mxu0 %v1064_v3  ;;  %479 = vmatpush.bf16.msra.mxu1 %v1064_v3 }
  0x7f   : > { %507 = vmatpush.bf16.msra.mxu2 %v1064_v3  ;;  %535 = vmatpush.bf16.msra.mxu3 %v1064_v3 }
  0x81   : > { %1010 = vmatmul.msk.bf16.vlgmr.msra.gmra.mxu0 %vm440_vm0, %v1068_v4  ;;  %1015 = vmatmul.msk.bf16.vlgmr.msra.gmra.mxu1 %vm440_vm0, %v1069_v5 }
  0x82   : > { %1020 = vmatmul.msk.bf16.vlgmr.msra.gmra.mxu2 %vm440_vm0, %v1070_v6  ;;  %1025 = vmatmul.msk.bf16.vlgmr.msra.gmra.mxu3 %vm440_vm0, %v1071_v7 }
  0xfe   : > { %v453_v8 = vpop.f32.mrf.mxu0  ;;  %v481_v9 = vpop.f32.mrf.mxu1 }
  0xff   : > { %v458_v10 = vpack.c.bf16 %v453_v8, %v453_v8  ;;  %v486_v11 = vpack.c.bf16 %v481_v9, %v481_v9 }
 0x101   : > { %460 = vst [vmem:[#allocation2] sm:$0xf] %v458_v10 }
 0x102   : > { %488 = vst [vmem:[#allocation2 + $0x4] sm:$0xf] %v486_v11 }
 0x105   : > { %v509_v12 = vpop.f32.mrf.mxu2  ;;  %v537_v13 = vpop.f32.mrf.mxu3 }
 0x106   : > { %v514_v14 = vpack.c.bf16 %v509_v12, %v509_v12  ;;  %v542_v15 = vpack.c.bf16 %v537_v13, %v537_v13  ;;  %v455_v16 = vpop.f32.mrf.mxu0  ;;  %v483_v17 = vpop.f32.mrf.mxu1 }
 0x107   : > { %v459_v18 = vpack.c.bf16 %v455_v16, %v455_v16  ;;  %v487_v19 = vpack.c.bf16 %v483_v17, %v483_v17 }
 0x108   : > { %516 = vst [vmem:[#allocation2 + $0x8] sm:$0xf] %v514_v14 }
 0x109   : > { %544 = vst [vmem:[#allocation2 + $0xc] sm:$0xf] %v542_v15 }
 0x10a   : > { %461 = vst [vmem:[#allocation2 + $0x10] sm:$0xf] %v459_v18 }
 0x10b   : > { %489 = vst [vmem:[#allocation2 + $0x14] sm:$0xf] %v487_v19 }
 0x10d   : > { %v511_v20 = vpop.f32.mrf.mxu2  ;;  %v539_v21 = vpop.f32.mrf.mxu3 }
 0x10e   : > { %v515_v22 = vpack.c.bf16 %v511_v20, %v511_v20  ;;  %v543_v23 = vpack.c.bf16 %v539_v21, %v539_v21 }
 0x110   : > { %517 = vst [vmem:[#allocation2 + $0x18] sm:$0xf] %v515_v22 }
 0x111   : > { %545 = vst [vmem:[#allocation2 + $0x1c] sm:$0xf] %v543_v23 }
 0x112 PF: > { %v1032_v24 = vld [vmem:[#allocation2] sm:$0xf]  ;;  %v1075_v25 = vld [vmem:[#allocation2 + $0xc] sm:$0xf0]  ;;  %v1073_v26 = vld [vmem:[#allocation2 + $0x4] sm:$0xf] }
 0x113   : > { %v1033_v27 = vor.u32 %v1075_v25, %v1032_v24  ;;  %v1034_v28 = vld [vmem:[#allocation2 + $0x10] sm:$0xf0]  ;;  %v1040_v29 = vld [vmem:[#allocation2 + $0x8] sm:$0xf]  ;;  %v1074_v33 = vld [vmem:[#allocation2 + $0xc] sm:$0xf] }
 0x114   : > { %v1037_v31 = vor.u32 %v1073_v26, %v1034_v28  ;;  %v1072_v35 = vld [vmem:[%s1845_s13] sm:$0xff]  ;;  %vm577_vm1 = vcmask 130048   ;;  %s2076_s6 = sld [smem:[#allocation19_spill]]  ;;  %s753_s15 = sshll.u32 %s1848_s18, 4  ;;  %s754_s15 = int_to_ptr.vmem [resolvable:$true] %s753_s15 }
 0x115   : > { %588 = vmatpush.bf16.msra.mxu0 %v1033_v27  ;;  %v637_v8 = vld [vmem:[%s329_s17] sm:$0xff]  ;;  %s2077_s5 = sld [smem:[#allocation20_spill]]  ;;  %v638_v27 = vld [vmem:[%s329_s17 + $0x8] sm:$0xff]  ;;  %s732_s16 = scalar_lea.sflag [#allocation5], %s1826_s21 }
 0x116   : > { %602 = vmatpush.bf16.msra.mxu1 %v1037_v31  ;;  %vm639_vm3 = vcmp.eq.s32.totalorder %v637_v8, 0  ;;  %vm655_vm4 = vcmp.eq.s32.totalorder %v637_v8, 1  ;;  %s2078_s28 = sld [smem:[#allocation21_spill]]  ;;  %vm681_vm6 = vcmp.eq.s32.totalorder %v637_v8, 2  ;;  %vm707_vm8 = vcmp.eq.s32.totalorder %v637_v8, 3 }
 0x117   : > { %v1076_v30 = vld [vmem:[#allocation2 + $0x14] sm:$0xf0]  ;;  %vm640_vm9 = vcmp.eq.s32.totalorder %v638_v27, 0  ;;  %vm656_vm10 = vcmp.eq.s32.totalorder %v638_v27, 1  ;;  %vm682_vm12 = vcmp.eq.s32.totalorder %v638_v27, 2  ;;  %s2079_s14 = sld [smem:[#allocation34_spill]] }
 0x118   : > { %v1041_v32 = vor.u32 %v1076_v30, %v1040_v29  ;;  %v1042_v34 = vld [vmem:[#allocation2 + $0x18] sm:$0xf0]  ;;  %1046 = vmatmul.msk.bf16.vlgmr.msra.gmra.mxu0 %vm577_vm1, %v1072_v35  ;;  %vm708_vm13 = vcmp.eq.s32.totalorder %v638_v27, 3 }
 0x119   : > { %v1045_v36 = vor.u32 %v1074_v33, %v1042_v34  ;;  %1047 = vmatmul.msk.bf16.vlgmr.msra.gmra.mxu1 %vm577_vm1, %v1072_v35 }
 0x11a   : > { %616 = vmatpush.bf16.msra.mxu2 %v1041_v32  ;;  %s1077_s2 = sshll.u32 %s2076_s6, 2 }
 0x11b   : > { %630 = vmatpush.bf16.msra.mxu3 %v1045_v36  ;;  %s748_s24 = sadd.s32 %s2077_s5, %s1077_s2 }
 0x11c   : > { %s1054_s29 = sshll.u32 %s2078_s28, 3 }
 0x11d   : > { %1048 = vmatmul.msk.bf16.vlgmr.msra.gmra.mxu2 %vm577_vm1, %v1072_v35  ;;  %s1908_s12 = sadd.s32 %s1054_s29, %s748_s24  ;;  %s1374_s28 = scalar_lea.hbm %s2079_s14, 128 }
 0x11e   : > { %1049 = vmatmul.msk.bf16.vlgmr.msra.gmra.mxu3 %vm577_vm1, %v1072_v35  ;;  %s1055_s17 = sshll.u32 %s1908_s12, 3 }
 0x11f   : > { %s752_s9 = scalar_lea.hbm %s2079_s14, %s1055_s17 }
 0x120   : > { %s755_s27 = sshll.u32 %s752_s9, 4  ;;  %s756_s27 = int_to_ptr.hbm [resolvable:$true] %s755_s27 }
 0x121   : > { %s1368_s1 = sshra.s32 %s756_s27, 4  ;;  %s1369_s1 = int_to_ptr.hbm [resolvable:$true] %s1368_s1 }
 0x122   : > { %s1370_s13 = scalar_lea.hbm %s1369_s1, 16  ;;  %p1375_p8 = scmp.lt.s32.totalorder %s1369_s1, %s2079_s14 }
 0x123   : > { %p1371_p9 = scmp.ne.s32.totalorder %s1369_s1, %s1370_s13  ;;  %p1376_p4 = scmp.lt.s32.totalorder %s1374_s28, %s1370_s13 }
 0x125   : > { %p1372_p13 = pnand %p1371_p9, %p1719_p11  ;;  %p1377_p10 = por %p1376_p4, %p1375_p8 }
 0x127   : > { %p1373_p0 = pneg %p1372_p13 }
 0x129   : > { %p1378_p5 = pnand %p1377_p10, %p1373_p0 }
 0x195   : > { %v590_v37 = vpop.f32.mrf.mxu0 }
 0x196   : > { %v604_v38 = vpop.f32.mrf.mxu1  ;;  %v641_v20 = vsel %vm639_vm3, %v590_v37, 0.0 }
 0x197   : > { %v643_v39 = vmax.f32 %v590_v37, %v604_v38  ;;  %v645_v40 = vmin.f32 %v590_v37, %v604_v38  ;;  %v657_v21 = vsel %vm655_vm4, %v604_v38, 0.0 }
 0x198   : > { %v659_v26 = vadd.f32 %v657_v21, %v641_v20 }
 0x199   : > { %v647_v41 = vsub.f32 %v645_v40, %v643_v39 }
 0x19b   : > { %v649_v42 = vmul.f32 1.442695, %v647_v41 }
 0x19d   : > { %1244 = vpow2.f32 %v649_v42  ;;  %v1865_v47 = vpop.f32.mrf.mxu0 }
 0x19e   : > { %v1867_v48 = vpop.f32.mrf.mxu1 }
 0x19f   : > { %v644_v52 = vmax.f32 %v1865_v47, %v1867_v48  ;;  %v646_v53 = vmin.f32 %v1865_v47, %v1867_v48  ;;  %v658_v40 = vsel %vm656_vm10, %v1867_v48, 0.0 }
 0x1a0   : > { %v1859_v43 = vpop.f32.mrf.mxu2 }
 0x1a1   : > { %v661_v44 = vmax.f32 %v643_v39, %v1859_v43  ;;  %v663_v45 = vmin.f32 %v643_v39, %v1859_v43  ;;  %v1863_v46 = vpop.f32.mrf.mxu3  ;;  %v648_v56 = vsub.f32 %v646_v53, %v644_v52  ;;  %vm671_vm2 = vcmp.gt.f32.partialorder %v1859_v43, %v643_v39 }
 0x1a2   : > { %v683_v29 = vsel %vm681_vm6, %v1859_v43, 0.0  ;;  %v709_v36 = vsel %vm707_vm8, %v1863_v46, 0.0  ;;  %v642_v39 = vsel %vm640_vm9, %v1865_v47, 0.0 }
 0x1a3   : > { %v665_v49 = vsub.f32 %v663_v45, %v661_v44  ;;  %v1870_v50 = vmax.f32 %v661_v44, %v1863_v46  ;;  %v689_v51 = vmin.f32 %v661_v44, %v1863_v46  ;;  %v1245_v57 = vpop.eup %1244  ;;  %v651_v59 = vmul.f32 1.442695, %v648_v56 }
 0x1a4   : > { %v653_v63 = vadd.f32 1.0, %v1245_v57  ;;  %vm697_vm5 = vcmp.gt.f32.partialorder %v1863_v46, %v661_v44  ;;  %v685_v32 = vadd.f32 %v683_v29, %v659_v26  ;;  %v660_v45 = vadd.f32 %v658_v40, %v642_v39 }
 0x1a5   : > { %v667_v54 = vmul.f32 1.442695, %v665_v49  ;;  %v691_v55 = vsub.f32 %v689_v51, %v1870_v50 }
 0x1a6   : > { %v711_v41 = vadd.f32 %v709_v36, %v685_v32 }
 0x1a7   : > { %1246 = vpow2.f32 %v667_v54  ;;  %v693_v58 = vmul.f32 1.442695, %v691_v55 }
 0x1a8   : > { %v1878_v60 = vpop.f32.mrf.mxu2  ;;  %1248 = vpow2.f32 %v651_v59 }
 0x1a9   : > { %v1881_v61 = vmax.f32 %v644_v52, %v1878_v60  ;;  %v664_v62 = vmin.f32 %v644_v52, %v1878_v60  ;;  %v1884_v0 = vpop.f32.mrf.mxu3  ;;  %1250 = vpow2.f32 %v693_v58  ;;  %vm672_vm7 = vcmp.gt.f32.partialorder %v1878_v60, %v644_v52 }
 0x1aa   : > { %v684_v43 = vsel %vm682_vm12, %v1878_v60, 0.0  ;;  %v710_v51 = vsel %vm708_vm13, %v1884_v0, 0.0 }
 0x1ab   : > { %v666_v1 = vsub.f32 %v664_v62, %v1881_v61  ;;  %v1889_v2 = vmax.f32 %v1881_v61, %v1884_v0  ;;  %v690_v3 = vmin.f32 %v1881_v61, %v1884_v0  ;;  %vm698_vm11 = vcmp.gt.f32.partialorder %v1884_v0, %v1881_v61 }
 0x1ac   : > { %v686_v47 = vadd.f32 %v684_v43, %v660_v45 }
 0x1ad   : > { %v1247_v4 = vpop.eup %1246  ;;  %v669_v5 = vmul.f32 1.442695, %v666_v1  ;;  %v692_v6 = vsub.f32 %v690_v3, %v1889_v2 }
 0x1ae   : > { %v673_v7 = vmul.f32 %v1247_v4, %v653_v63  ;;  %v677_v10 = vadd.f32 %v1247_v4, %v653_v63  ;;  %v1249_v12 = vpop.eup %1248  ;;  %v712_v52 = vadd.f32 %v710_v51, %v686_v47 }
 0x1af   : > { %1252 = vpow2.f32 %v669_v5  ;;  %v695_v11 = vmul.f32 1.442695, %v692_v6  ;;  %v1251_v13 = vpop.eup %1250  ;;  %v654_v16 = vadd.f32 1.0, %v1249_v12 }
 0x1b0   : > { %v675_v9 = vadd.f32 1.0, %v673_v7 }
 0x1b1   : > { %1254 = vpow2.f32 %v695_v11 }
 0x1b2   : > { %v679_v14 = vsel %vm671_vm2, %v675_v9, %v677_v10 }
 0x1b3   : > { %v699_v15 = vmul.f32 %v1251_v13, %v679_v14  ;;  %v703_v19 = vadd.f32 %v1251_v13, %v679_v14 }
 0x1b5   : > { %v1253_v17 = vpop.eup %1252  ;;  %v701_v18 = vadd.f32 1.0, %v699_v15 }
 0x1b6   : > { %v674_v22 = vmul.f32 %v1253_v17, %v654_v16  ;;  %v678_v25 = vadd.f32 %v1253_v17, %v654_v16 }
 0x1b7   : > { %v705_v23 = vsel %vm697_vm5, %v701_v18, %v703_v19  ;;  %v1255_v28 = vpop.eup %1254 }
 0x1b8   : > { %1256 = vlog2.f32 %v705_v23  ;;  %v676_v24 = vadd.f32 1.0, %v674_v22 }
 0x1ba   : > { %v680_v30 = vsel %vm672_vm7, %v676_v24, %v678_v25 }
 0x1bb   : > { %v700_v31 = vmul.f32 %v1255_v28, %v680_v30  ;;  %v704_v34 = vadd.f32 %v1255_v28, %v680_v30 }
 0x1bd   : > { %v702_v33 = vadd.f32 1.0, %v700_v31 }
 0x1be   : > { %v1257_v35 = vpop.eup %1256 }
 0x1bf   : > { %v714_v37 = vmul.f32 0.6931472, %v1257_v35  ;;  %v706_v38 = vsel %vm698_vm11, %v702_v33, %v704_v34 }
 0x1c0   : > { %1258 = vlog2.f32 %v706_v38 }
 0x1c1   : > { %v717_v42 = vadd.f32 %v714_v37, %v1870_v50 }
 0x1c3   : > { %v719_v44 = vsub.f32 %v717_v42, %v711_v41 }
 0x1c5   : > { %721 = vst [vmem:[%s1848_s18] sm:$0xff] %v719_v44  ;;  %v723_v46 = vsub.f32 0.0, %v719_v44 }
 0x1c6   : > { %v1259_v48 = vpop.eup %1258 }
 0x1c7   : > { %v725_v49 = vmul.f32 1.442695, %v723_v46  ;;  %v716_v50 = vmul.f32 0.6931472, %v1259_v48 }
 0x1c9   : > { %1260 = vpow2.f32 %v725_v49  ;;  %v718_v53 = vadd.f32 %v716_v50, %v1889_v2 }
 0x1cb   : > { %v720_v54 = vsub.f32 %v718_v53, %v712_v52 }
 0x1cd   : > { %722 = vst [vmem:[%s1848_s18 + $0x8] sm:$0xff] %v720_v54  ;;  %v724_v55 = vsub.f32 0.0, %v720_v54 }
 0x1ce   : > { %1381 = shalt.err (!%p1378_p5)
}
 0x1cf   : > { %s1563_s18 = smov 128   ;;  %s1564_s29 = smov 256   ;;  %v1261_v56 = vpop.eup %1260  ;;  %v727_v57 = vmul.f32 1.442695, %v724_v55 }
 0x1d0   : > { %s1565_s0 = smov 8   ;;  %729 = vst [vmem:[%s1851_s22] sm:$0xff] %v1261_v56  ;;  %s2081_s1 = sld [smem:[#allocation35_spill]] }
 0x1d1   : > { %1085 = dma.vmem_to_hbm [thread:$0]  (%p1719_p11), %s754_s15, 256, %s756_s27, %s732_s16, %s1563_s18, %s1564_s29, %s1565_s0   ;;  %1262 = vpow2.f32 %v727_v57 }
 0x1d2   : > { %s774_s6 = sshll.u32 %s1851_s22, 4  ;;  %s737_s28 = scalar_lea.sflag [#allocation11], %s1826_s21  ;;  %s775_s6 = int_to_ptr.vmem [resolvable:$true] %s774_s6 }
 0x1d6   : > { %s773_s13 = scalar_lea.hbm %s2081_s1, %s1055_s17  ;;  %s1402_s16 = scalar_lea.hbm %s2081_s1, 128 }
 0x1d7   : > { %s776_s5 = sshll.u32 %s773_s13, 4  ;;  %v1263_v58 = vpop.eup %1262  ;;  %s777_s5 = int_to_ptr.hbm [resolvable:$true] %s776_s5 }
 0x1d8   : > { %730 = vst [vmem:[%s1851_s22 + $0x8] sm:$0xff] %v1263_v58  ;;  %s1396_s2 = sshra.s32 %s777_s5, 4  ;;  %s1397_s2 = int_to_ptr.hbm [resolvable:$true] %s1396_s2 }
 0x1d9   : > { %s1398_s15 = scalar_lea.hbm %s1397_s2, 16  ;;  %p1403_p3 = scmp.lt.s32.totalorder %s1397_s2, %s2081_s1 }
 0x1da   : > { %p1399_p6 = scmp.ne.s32.totalorder %s1397_s2, %s1398_s15  ;;  %p1404_p1 = scmp.lt.s32.totalorder %s1402_s16, %s1398_s15 }
 0x1dc   : > { %p1400_p7 = pnand %p1399_p6, %p1719_p11  ;;  %p1405_p2 = por %p1404_p1, %p1403_p3 }
 0x1de   : > { %p1401_p12 = pneg %p1400_p7 }
 0x1e0   : > { %p1406_p9 = pnand %p1405_p2, %p1401_p12 }
 0x1e2   : > { %1409 = shalt.err (!%p1406_p9)
}
 0x1e3   : > { %1086 = dma.vmem_to_hbm [thread:$0]  (%p1719_p11), %s775_s6, 256, %s777_s5, %s737_s28, %s1563_s18, %s1564_s29, %s1565_s0  }
 0x1e4 PF: > { %s2082_s21 = sld [smem:[#allocation17_spill]]  ;;  %p1107_p13 = scmp.ge.s32.totalorder %s1556_s8, 2 }
 0x1e5   : > { %s2083_s22 = sld [smem:[#allocation29_spill]] }
 0x1ea   : > { %s791_s7 = sand.u32 1, %s2082_s21  }
 0x1eb   : > { %p2084_p0 = scmp.ne.s32.totalorder %s2083_s22, 0  ;;  %s792_s9 = scalar_lea.sflag [#allocation5], %s791_s7 }
 0x1ed   : > { %p1100_p8 = pnand %p1107_p13, %p2084_p0 }
 0x1ef   : > { %p1101_p4 = pneg %p1100_p8 }
 0x1f1   : > { %1487 = dma.done.wait (%p1101_p4), %s792_s9, 256  }
 0x1f2   : > { %1489 = vsyncadd (%p1101_p4), %s792_s9, 4294967040  ;;  %s802_s13 = scalar_lea.sflag [#allocation11], %s791_s7 }
 0x1f3   : > { %1491 = dma.done.wait (%p1101_p4), %s802_s13, 256  }
 0x1f4   : > { %1493 = vsyncadd (%p1101_p4), %s802_s13, 4294967040  ;;  %s28_s8 = sadd.s32 1, %s1556_s8   ;;  %s2086_s21 = sld [smem:[#allocation18_spill]] }
 0x1f5   : > { %p1966_p10 = scmp.ge.s32.totalorder %s28_s8, 10   ;;  %s2087_s28 = sld [smem:[#allocation22_spill]] }
 0x1f6   : > { %s2088_s29 = sld [smem:[#allocation23_spill]]  ;;  %s2092_s18 = smov %s1500_s19 }
 0x1f7   : > { %s2089_s0 = sld [smem:[#allocation24_spill]]  ;;  %s2093_s19 = smov %s1504_s20 }
 0x1f8   : > { %s2090_s6 = sld [smem:[#allocation25_spill]]  ;;  %s2094_s20 = smov %s1792_s4 }
 0x1f9   : > { %s2091_s7 = sld [smem:[#allocation28_spill]]  ;;  %s2095_s22 = smov %s1516_s23 }
 0x1fa   : > { %s2096_s23 = smov %s1743_s11  ;;  %s2097_s24 = smov %s1524_s25 }
 0x1fb   : > { %s2098_s25 = smov %s1528_s26  ;;  %s2099_s26 = smov %s1769_s10 }
 0x1fc   : > { %s2100_s27 = smov %s1544_s30  ;;  %27 = sbr.rel (!%p1966_p10) target bundleno = 22 (0x16), region = 129 }
 0x1fd   : > { %s2101_s30 = smov %s2089_s0 }
 0x201   :  { %808 = vsyncpa [#allocation4], 1 }
 0x202   :  { %810 = vsyncpa [#allocation4 + $0x1], 1 }
 0x203   :  { %811 = vsyncpa [#allocation7], 1 }
 0x204   :  { %813 = vsyncpa [#allocation7 + $0x1], 1 }
 0x205   :  { %814 = vsyncpa [#allocation5], 1 }
 0x206   :  { %816 = vsyncpa [#allocation5 + $0x1], 1 }
 0x207   :  { %817 = vsyncpa [#allocation11], 1 }
 0x208   :  { %819 = vsyncpa [#allocation11 + $0x1], 1 }

</bundles_post_ra>
